<compile_context>
chip_gen: v7x
topology: tpu7x:2x2x1
jax: 0.10.0
libtpu: 0.0.40
codegen_flags: <defaults>
</compile_context>

<pallas_src>
import jax
import jax.numpy as jnp
from jax.experimental import pallas as pl
from jax.experimental.pallas import tpu as pltpu

LANE = 128                  # vreg lane width / MXU tile edge
BF16_SUBLANE = 16           # bf16 rows per packed vreg
TILE_H = 512                # hidden tile for the low-VMEM (v7x) fallback path
WEIGHT_BUDGET = 40 << 20    # resident weights above this -> hidden-tiled path
VMEM_CAP = 48 << 20         # keep total scoped VMEM under v7x physical (64 MiB)


def _round_up(v, m):
    return ((v + m - 1) // m) * m


def _pad_to(a, shape):
    pads = [(0, t - s) for s, t in zip(a.shape, shape)]
    if all(p == (0, 0) for p in pads):
        return a
    return jnp.pad(a, pads)   # zero padding is load-bearing for correctness


# --------------------------------------------------------------------------
# Kernels
# --------------------------------------------------------------------------
def _resident_kernel(x_ref, w1_ref, b1_ref, w2_ref, b2_ref, o_ref):
    # Cast x in-kernel (free under the MXU); both matmuls accumulate in f32.
    xb = x_ref[...].astype(w1_ref.dtype)
    h = jnp.dot(xb, w1_ref[...], preferred_element_type=jnp.float32)
    h = jax.nn.sigmoid(h + b1_ref[...])            # f32 VPU add + EUP exp
    y = jnp.dot(h.astype(w2_ref.dtype), w2_ref[...],
                preferred_element_type=jnp.float32)
    o_ref[...] = (y + b2_ref[...]).astype(o_ref.dtype)


def _hidden_tiled_kernel(x_ref, w1_ref, b1_ref, w2_ref, b2_ref, o_ref, acc_ref):
    # Grid = (batch_tiles, hidden_tiles); hidden is the reduction axis for the
    # second matmul, accumulated in an f32 VMEM scratch.
    k = pl.program_id(1)

    @pl.when(k == 0)
    def _():
        acc_ref[...] = jnp.zeros_like(acc_ref)

    xb = x_ref[...].astype(w1_ref.dtype)
    h = jnp.dot(xb, w1_ref[...], preferred_element_type=jnp.float32)
    h = jax.nn.sigmoid(h + b1_ref[...])
    acc_ref[...] += jnp.dot(h.astype(w2_ref.dtype), w2_ref[...],
                            preferred_element_type=jnp.float32)

    @pl.when(k == pl.num_programs(1) - 1)
    def _():
        o_ref[...] = (acc_ref[...] + b2_ref[...]).astype(o_ref.dtype)


# --------------------------------------------------------------------------
# One-time parameter preparation (hoisted out of the forward)
# --------------------------------------------------------------------------
def prepare_perceptron_params(w1, b1, w2, b2, *, param_dtype=jnp.bfloat16):
    """Pad + cast the weights once.  param_dtype=jnp.float32 reproduces the
    PyTorch f32 reference exactly; bf16 (default) is the MXU-friendly choice."""
    in_f, hid = w1.shape
    out_f = w2.shape[1]
    out_p = _round_up(out_f, LANE)
    hid_p = _round_up(hid, LANE)
    itemsize = jnp.dtype(param_dtype).itemsize
    if (in_f * hid_p + hid_p * out_p) * itemsize > WEIGHT_BUDGET:
        # Hidden-tiled fallback path: hidden must be a multiple of TILE_H.
        hid_p = _round_up(hid, TILE_H)
    w1_p = _pad_to(w1, (in_f, hid_p)).astype(param_dtype)
    w2_p = _pad_to(w2, (hid_p, out_p)).astype(param_dtype)
    b1_p = _pad_to(b1.reshape(1, -1), (1, hid_p)).astype(jnp.float32)
    b2_p = _pad_to(b2.reshape(1, -1), (1, out_p)).astype(jnp.float32)
    return (w1_p, b1_p, w2_p, b2_p, out_f)


# --------------------------------------------------------------------------
# Forward
# --------------------------------------------------------------------------
def perceptron_forward(x, prepared, *, tile_b=512):
    """x: (B, in_features); prepared: output of prepare_perceptron_params."""
    w1_p, b1_p, w2_p, b2_p, out_f = prepared
    B, in_f = x.shape
    assert w1_p.shape[0] == in_f, "x feature dim must match prepared w1"
    hid_p = w1_p.shape[1]
    out_p = w2_p.shape[1]
    out_dtype = x.dtype

    x_bytes = jnp.dtype(x.dtype).itemsize
    o_bytes = jnp.dtype(out_dtype).itemsize
    w_bytes = jnp.dtype(w1_p.dtype).itemsize

    resident_w_bytes = (w1_p.size + w2_p.size) * w_bytes
    use_resident = resident_w_bytes <= WEIGHT_BUDGET

    # Batch tile: large (up to tile_b) but always >=2 grid steps when B > 16 so
    # the "parallel" axis shards across both TensorCores on v7x; tiny batches
    # round to 16 rows (bf16 sublane packing).
    if B <= BF16_SUBLANE:
        tb = _round_up(max(B, 1), BF16_SUBLANE)
    else:
        tb = min(tile_b, _round_up((B + 1) // 2, BF16_SUBLANE))

    def vmem_needed(tb_):
        if use_resident:
            fixed = (resident_w_bytes                       # 1 buffer each
                     + (b1_p.size + b2_p.size) * 4)
            acc = 0
        else:
            fixed = ((in_f * TILE_H + TILE_H * out_p) * w_bytes * 2   # dbl buf
                     + TILE_H * 4 * 2 + out_p * 4)
            acc = tb_ * out_p * 4
        tiles = tb_ * in_f * x_bytes * 2 + tb_ * out_p * o_bytes * 2
        return fixed + tiles + acc

    # Shrink the batch tile if the footprint would not fit v7x VMEM.
    while tb > BF16_SUBLANE and vmem_needed(tb) > VMEM_CAP:
        tb = max(BF16_SUBLANE, _round_up(tb // 2, BF16_SUBLANE))

    Bp = _round_up(B, tb)
    grid_b = Bp // tb
    # No lane padding of in_f: the block's last dim equals the full array dim.
    x_p = _pad_to(x, (Bp, in_f))

    vmem_limit = min(max(int(vmem_needed(tb) * 1.25) + (2 << 20), 32 << 20),
                     64 << 20)

    if use_resident:
        out_padded = pl.pallas_call(
            _resident_kernel,
            out_shape=jax.ShapeDtypeStruct((Bp, out_p), out_dtype),
            grid=(grid_b,),
            in_specs=[
                # x: one batch tile per grid step (double-buffered pipeline).
                pl.BlockSpec((tb, in_f), lambda i: (i, 0)),
                # Weights/biases: constant block index + single buffer ->
                # DMA'd once, half the VMEM of the default double buffer.
                pl.BlockSpec((in_f, hid_p), lambda i: (0, 0),
                             pipeline_mode=pl.Buffered(1)),
                pl.BlockSpec((1, hid_p), lambda i: (0, 0),
                             pipeline_mode=pl.Buffered(1)),
                pl.BlockSpec((hid_p, out_p), lambda i: (0, 0),
                             pipeline_mode=pl.Buffered(1)),
                pl.BlockSpec((1, out_p), lambda i: (0, 0),
                             pipeline_mode=pl.Buffered(1)),
            ],
            out_specs=pl.BlockSpec((tb, out_p), lambda i: (i, 0)),
            compiler_params=pltpu.CompilerParams(
                dimension_semantics=("parallel",),
                vmem_limit_bytes=vmem_limit),
        )(x_p, w1_p, b1_p, w2_p, b2_p)
    else:
        assert hid_p % TILE_H == 0
        grid_h = hid_p // TILE_H
        out_padded = pl.pallas_call(
            _hidden_tiled_kernel,
            out_shape=jax.ShapeDtypeStruct((Bp, out_p), out_dtype),
            grid=(grid_b, grid_h),
            in_specs=[
                pl.BlockSpec((tb, in_f), lambda i, k: (i, 0)),
                pl.BlockSpec((in_f, TILE_H), lambda i, k: (0, k)),
                pl.BlockSpec((1, TILE_H), lambda i, k: (0, k)),
                pl.BlockSpec((TILE_H, out_p), lambda i, k: (k, 0)),
                pl.BlockSpec((1, out_p), lambda i, k: (0, 0),
                             pipeline_mode=pl.Buffered(1)),
            ],
            out_specs=pl.BlockSpec((tb, out_p), lambda i, k: (i, 0)),
            scratch_shapes=[pltpu.VMEM((tb, out_p), jnp.float32)],
            compiler_params=pltpu.CompilerParams(
                dimension_semantics=("parallel", "arbitrary"),
                vmem_limit_bytes=vmem_limit),
        )(x_p, w1_p, b1_p, w2_p, b2_p)

    # Slice away batch / output-feature padding (already in x.dtype).
    return out_padded[:B, :out_f]


def perceptron_reference(x, w1, b1, w2, b2):
    h = jax.nn.sigmoid(x @ w1 + b1)
    return h @ w2 + b2


if __name__ == "__main__":
    # Small shapes consistent with the module's forward.
    batch = 8
    in_features = 32
    hidden_features = 64
    out_features = 16

    key = jax.random.PRNGKey(0)
    kx, kw1, kb1, kw2, kb2 = jax.random.split(key, 5)

    x = jax.random.normal(kx, (batch, in_features), dtype=jnp.float32)
    w1 = jax.random.normal(kw1, (in_features, hidden_features), dtype=jnp.float32) * 0.1
    b1 = jax.random.normal(kb1, (hidden_features,), dtype=jnp.float32) * 0.1
    w2 = jax.random.normal(kw2, (hidden_features, out_features), dtype=jnp.float32) * 0.1
    b2 = jax.random.normal(kb2, (out_features,), dtype=jnp.float32) * 0.1

    # One-time parameter preparation (pad + bf16 cast), hoisted out of forward.
    prepared = prepare_perceptron_params(w1, b1, w2, b2)

    out = perceptron_forward(x, prepared)
    out = jax.block_until_ready(out)

    ref = perceptron_reference(x, w1, b1, w2, b2)
    assert out.shape == (batch, out_features)
    # Loose tolerance: matmul operands are bf16 (f32 accumulation). Pass
    # param_dtype=jnp.float32 to prepare_perceptron_params for exact f32.
    assert jnp.allclose(out, ref, atol=5e-2, rtol=5e-2), "mismatch vs reference"

    print("KERNEL_OK")
</pallas_src>

<mosaic_0001>
module attributes {stable_mosaic.version = 11 : i64} {
  func.func @_resident_kernel(%arg0: i32, %arg1: memref<16x32xf32, #tpu.memory_space<vmem>>, %arg2: memref<32x128xbf16, #tpu.memory_space<vmem>>, %arg3: memref<1x128xf32, #tpu.memory_space<vmem>>, %arg4: memref<128x128xbf16, #tpu.memory_space<vmem>>, %arg5: memref<1x128xf32, #tpu.memory_space<vmem>>, %arg6: memref<16x128xf32, #tpu.memory_space<vmem>>) attributes {dimension_semantics = [#tpu.dimension_semantics<parallel>], iteration_bounds = array<i64: 1>, scalar_prefetch = 0 : i64, scratch_operands = 0 : i64, tpu.core_type = #tpu.core_type<tc>, window_params = [{transform_indices = @transform_0, window_bounds = array<i64: 16, 32>}, {pipeline_mode = #tpu.pipeline_mode<synchronous>, transform_indices = @transform_1, window_bounds = array<i64: 32, 128>}, {pipeline_mode = #tpu.pipeline_mode<synchronous>, transform_indices = @transform_2, window_bounds = array<i64: 1, 128>}, {pipeline_mode = #tpu.pipeline_mode<synchronous>, transform_indices = @transform_3, window_bounds = array<i64: 128, 128>}, {pipeline_mode = #tpu.pipeline_mode<synchronous>, transform_indices = @transform_4, window_bounds = array<i64: 1, 128>}, {transform_indices = @transform_5, window_bounds = array<i64: 16, 128>}]} {
    %c0 = arith.constant 0 : index
    %c0_0 = arith.constant 0 : index
    %0 = vector.load %arg1[%c0, %c0_0] : memref<16x32xf32, #tpu.memory_space<vmem>>, vector<16x32xf32>
    %1 = arith.truncf %0 : vector<16x32xf32> to vector<16x32xbf16>
    %c0_1 = arith.constant 0 : index
    %c0_2 = arith.constant 0 : index
    %2 = vector.load %arg2[%c0_1, %c0_2] : memref<32x128xbf16, #tpu.memory_space<vmem>>, vector<32x128xbf16>
    %cst = arith.constant dense<0.000000e+00> : vector<16x128xf32>
    %3 = tpu.matmul %1, %2, %cst {dimension_numbers = #tpu.dot_dimension_numbers<[1], [0], [0], [1], [0, 0, 1, 1], [], []>} : vector<16x32xbf16>, vector<32x128xbf16>, vector<16x128xf32> -> vector<16x128xf32>
    %c0_3 = arith.constant 0 : index
    %c0_4 = arith.constant 0 : index
    %4 = vector.load %arg3[%c0_3, %c0_4] : memref<1x128xf32, #tpu.memory_space<vmem>>, vector<1x128xf32>
    %5 = vector.broadcast %4 : vector<1x128xf32> to vector<16x128xf32>
    %6 = arith.addf %3, %5 : vector<16x128xf32>
    %7 = arith.negf %6 : vector<16x128xf32>
    %8 = math.exp %7 : vector<16x128xf32>
    %cst_5 = arith.constant 1.000000e+00 : f32
    %9 = vector.broadcast %cst_5 : f32 to vector<16x128xf32>
    %10 = arith.addf %9, %8 : vector<16x128xf32>
    %11 = arith.divf %9, %10 : vector<16x128xf32>
    %12 = arith.truncf %11 : vector<16x128xf32> to vector<16x128xbf16>
    %c0_6 = arith.constant 0 : index
    %c0_7 = arith.constant 0 : index
    %13 = vector.load %arg4[%c0_6, %c0_7] : memref<128x128xbf16, #tpu.memory_space<vmem>>, vector<128x128xbf16>
    %cst_8 = arith.constant dense<0.000000e+00> : vector<16x128xf32>
    %14 = tpu.matmul %12, %13, %cst_8 {dimension_numbers = #tpu.dot_dimension_numbers<[1], [0], [0], [1], [0, 0, 1, 1], [], []>} : vector<16x128xbf16>, vector<128x128xbf16>, vector<16x128xf32> -> vector<16x128xf32>
    %c0_9 = arith.constant 0 : index
    %c0_10 = arith.constant 0 : index
    %15 = vector.load %arg5[%c0_9, %c0_10] : memref<1x128xf32, #tpu.memory_space<vmem>>, vector<1x128xf32>
    %16 = vector.broadcast %15 : vector<1x128xf32> to vector<16x128xf32>
    %17 = arith.addf %14, %16 : vector<16x128xf32>
    %c0_11 = arith.constant 0 : index
    %c0_12 = arith.constant 0 : index
    %18 = vector.load %arg6[%c0_11, %c0_12] : memref<16x128xf32, #tpu.memory_space<vmem>>, vector<16x128xf32>
    tpu.vector_store %arg6[%c0_11, %c0_12], %17 {strides = array<i32>} : memref<16x128xf32, #tpu.memory_space<vmem>>, vector<16x128xf32>,
    return
  }
  func.func @transform_0(%arg0: i32) -> (i32, i32) {
    %c0_i32 = arith.constant 0 : i32
    %c0_i32_0 = arith.constant 0 : i32
    return %arg0, %c0_i32 : i32, i32
  }
  func.func @transform_1(%arg0: i32) -> (i32, i32) {
    %c0_i32 = arith.constant 0 : i32
    %c0_i32_0 = arith.constant 0 : i32
    %c0_i32_1 = arith.constant 0 : i32
    return %c0_i32, %c0_i32_0 : i32, i32
  }
  func.func @transform_2(%arg0: i32) -> (i32, i32) {
    %c0_i32 = arith.constant 0 : i32
    %c0_i32_0 = arith.constant 0 : i32
    %c0_i32_1 = arith.constant 0 : i32
    return %c0_i32, %c0_i32_0 : i32, i32
  }
  func.func @transform_3(%arg0: i32) -> (i32, i32) {
    %c0_i32 = arith.constant 0 : i32
    %c0_i32_0 = arith.constant 0 : i32
    %c0_i32_1 = arith.constant 0 : i32
    return %c0_i32, %c0_i32_0 : i32, i32
  }
  func.func @transform_4(%arg0: i32) -> (i32, i32) {
    %c0_i32 = arith.constant 0 : i32
    %c0_i32_0 = arith.constant 0 : i32
    %c0_i32_1 = arith.constant 0 : i32
    return %c0_i32, %c0_i32_0 : i32, i32
  }
  func.func @transform_5(%arg0: i32) -> (i32, i32) {
    %c0_i32 = arith.constant 0 : i32
    %c0_i32_0 = arith.constant 0 : i32
    return %arg0, %c0_i32 : i32, i32
  }
}

</mosaic_0001>

<bundles_post_ra>
// kernel: tpu_custom_call.1
= control target key start
LH: loop header
LB: loop body
LE: loop exit
PB: predicated region body
PF: predicated region fallthrough
CT: control target
= control target key end

     0   :  { %10 = vsyncpa [#allocation3], 0  ;;  %s562_s0 = inlined_call_operand.hbm [shape: f32[16,32], index: 0, kind: input, shape index: {}]   ;;  %s563_s1 = inlined_call_operand.hbm [shape: bf16[32,128], index: 1, kind: input, shape index: {}]   ;;  %s564_s2 = inlined_call_operand.vmem [shape: f32[1,128], index: 2, kind: input, shape index: {}]   ;;  %s565_s3 = inlined_call_operand.hbm [shape: bf16[128,128], index: 3, kind: input, shape index: {}]   ;;  %s566_s4 = inlined_call_operand.vmem [shape: f32[1,128], index: 4, kind: input, shape index: {}]   ;;  %s567_s5 = inlined_call_operand.hbm [shape: f32[16,128], index: 5, kind: output, shape index: {}]  }
   0x1   :  { %11 = vsyncpa [#allocation6], 0 }
   0x2   :  { %12 = vsyncpa [#allocation4], 0  ;;  %s456_s18 = smov [#allocation5]   ;;  %s362_s22 = scalar_lea.hbm %s563_s1, 256 }
   0x3   :  { %s30_s19 = sshll.u32 %s456_s18, 4  ;;  %p363_p0 = scmp.ne.s32.totalorder %s563_s1, %s362_s22  ;;  %s31_s19 = int_to_ptr.vmem [resolvable:$true] %s30_s19 }
   0x4   :  { %p366_p1 = scmp.lt.u32.totalorder %s362_s22, %s563_s1 }
   0x6   :  { %p368_p2 = pnand %p366_p1, %p363_p0 }
   0x8   :  { %371 = shalt.err (!%p368_p2)
}
   0x9   :  { %s372_s27 = scalar_lea.vmem %s31_s19, 256  ;;  %p377_p4 = scmp.lt.s32.totalorder %s31_s19, %s31_s19 }
   0xa   :  { %p373_p3 = scmp.ne.s32.totalorder %s31_s19, %s372_s27  ;;  %p378_p5 = scmp.lt.s32.totalorder %s372_s27, %s372_s27 }
   0xc   :  { %p379_p6 = por %p378_p5, %p377_p4 }
   0xe   :  { %p380_p7 = pnand %p379_p6, %p373_p3 }
  0x10   :  { %383 = shalt.err (!%p380_p7)
}
  0x11   :  { %s457_s28 = smov 64   ;;  %s458_s29 = smov 4  }
  0x12   :  { %36 = dma.hbm_to_vmem [thread:$0]  %s563_s1, 256, %s31_s19, [#allocation6], %s457_s28, %s457_s28, %s458_s29  }
  0x13   :  { %s459_s7 = smov [#allocation2]   ;;  %s384_s11 = scalar_lea.hbm %s562_s0, 256 }
  0x14   :  { %s18_s8 = sshll.u32 %s459_s7, 4  ;;  %p385_p8 = scmp.ne.s32.totalorder %s562_s0, %s384_s11  ;;  %s19_s8 = int_to_ptr.vmem [resolvable:$true] %s18_s8 }
  0x15   :  { %p388_p9 = scmp.lt.u32.totalorder %s384_s11, %s562_s0 }
  0x17   :  { %p390_p10 = pnand %p388_p9, %p385_p8 }
  0x19   :  { %393 = shalt.err (!%p390_p10)
}
  0x1a   :  { %s394_s16 = scalar_lea.vmem %s19_s8, 256  ;;  %p399_p12 = scmp.lt.s32.totalorder %s19_s8, %s19_s8 }
  0x1b   :  { %p395_p11 = scmp.ne.s32.totalorder %s19_s8, %s394_s16  ;;  %p400_p13 = scmp.lt.s32.totalorder %s394_s16, %s394_s16 }
  0x1d   :  { %p401_p0 = por %p400_p13, %p399_p12 }
  0x1f   :  { %p402_p1 = pnand %p401_p0, %p395_p11 }
  0x21   :  { %405 = shalt.err (!%p402_p1)
}
  0x22   :  { %s460_s1 = smov 128   ;;  %s461_s17 = smov 8  }
  0x23   :  { %24 = dma.hbm_to_vmem [thread:$0]  %s562_s0, 256, %s19_s8, [#allocation3], %s460_s1, %s460_s1, %s461_s17  }
  0x24   :  { %s462_s20 = smov [#allocation7]   ;;  %s406_s24 = scalar_lea.hbm %s565_s3, 1024 }
  0x25   :  { %s44_s21 = sshll.u32 %s462_s20, 4  ;;  %p407_p2 = scmp.ne.s32.totalorder %s565_s3, %s406_s24  ;;  %s45_s21 = int_to_ptr.vmem [resolvable:$true] %s44_s21 }
  0x26   :  { %p410_p3 = scmp.lt.u32.totalorder %s406_s24, %s565_s3 }
  0x28   :  { %p412_p4 = pnand %p410_p3, %p407_p2 }
  0x2a   :  { %415 = shalt.err (!%p412_p4)
}
  0x2b   :  { %s416_s6 = scalar_lea.vmem %s45_s21, 1024  ;;  %p421_p6 = scmp.lt.s32.totalorder %s45_s21, %s45_s21 }
  0x2c   :  { %p417_p5 = scmp.ne.s32.totalorder %s45_s21, %s416_s6  ;;  %p422_p7 = scmp.lt.s32.totalorder %s416_s6, %s416_s6 }
  0x2e   :  { %p423_p8 = por %p422_p7, %p421_p6 }
  0x30   :  { %p424_p9 = pnand %p423_p8, %p417_p5 }
  0x32   :  { %427 = shalt.err (!%p424_p9)
}
  0x33   :  { %50 = dma.hbm_to_vmem [thread:$0]  %s565_s3, 1024, %s45_s21, [#allocation6], %s457_s28, %s457_s28, %s458_s29  }
  0x34   :  { %450 = dma.done.wait [#allocation3], 256  }
  0x35   :  { %451 = vsyncadd [#allocation3], 4294967040 }
  0x36   :  { %452 = dma.done.wait [#allocation6], 1280  }
  0x37   :  { %453 = vsyncadd [#allocation6], 4294966016  ;;  %v463_v0 = vmov 0.0   ;;  %vm464_vm0 = vmmov 0   ;;  %v344_v1 = vld [vmem:[#allocation5] sm:$0xff]   ;;  %v345_v2 = vld [vmem:[#allocation5 + $0x8] sm:$0xff]  }
  0x38   :  { %306 = vmatprep.subr.bf16.mxu0 %v463_v0  ;;  %310 = vmatprep.mubr.msk.bf16.mxu0 %vm464_vm0, %v463_v0  ;;  %v63_v3 = vld [vmem:[#allocation2] sm:$0xff]  ;;  %v64_v4 = vld [vmem:[#allocation2 + $0x8] sm:$0xff]  ;;  %vm89_vm1 = vcmask 261120   ;;  %v348_v8 = vld [vmem:[#allocation7 + $0x10] sm:$0xff]   ;;  %s465_s8 = smov [#allocation8]  }
  0x39   :  { %314 = vmatprep.subr.bf16.mxu1 %v463_v0  ;;  %330 = vmatprep.mubr.msk.bf16.mxu1 %vm464_vm0, %v463_v0  ;;  %v65_v5 = vpack.c.bf16 %v64_v4, %v63_v3  ;;  %v346_v6 = vld [vmem:[#allocation7] sm:$0xff]   ;;  %v347_v7 = vld [vmem:[#allocation7 + $0x8] sm:$0xff]   ;;  %v349_v9 = vld [vmem:[#allocation7 + $0x18] sm:$0xff]   ;;  %s266_s9 = sshll.u32 %s465_s8, 4  ;;  %s267_s9 = int_to_ptr.vmem [resolvable:$true] %s266_s9 }
  0x3a   :  { %307 = vmatpush3.bf16.msra.mxu0 %v344_v1  ;;  %315 = vmatpush3.bf16.msra.mxu1 %v346_v6  ;;  %v350_v10 = vld [vmem:[#allocation7 + $0x20] sm:$0xff]   ;;  %v351_v11 = vld [vmem:[#allocation7 + $0x28] sm:$0xff]   ;;  %v352_v12 = vld [vmem:[#allocation7 + $0x30] sm:$0xff]   ;;  %s428_s10 = scalar_lea.vmem %s267_s9, 256  ;;  %p433_p11 = scmp.lt.s32.totalorder %s267_s9, %s267_s9 }
  0x3b   :  { %308 = vmatprep.subr.bf16.mxu0 %v463_v0  ;;  %316 = vmatprep.subr.bf16.mxu1 %v463_v0  ;;  %v353_v13 = vld [vmem:[#allocation7 + $0x38] sm:$0xff]   ;;  %v279_v14 = vld [vmem:[%s564_s2] ss:$0 sm:$0xff]  ;;  %p429_p10 = scmp.ne.s32.totalorder %s267_s9, %s428_s10  ;;  %p434_p12 = scmp.lt.s32.totalorder %s428_s10, %s428_s10 }
  0x3c   :  { %v285_v30 = vld [vmem:[%s566_s4] ss:$0 sm:$0xff] }
  0x3d   :  { %p435_p13 = por %p434_p12, %p433_p11 }
  0x3e   :  { %309 = vmatpush3.bf16.msra.mxu0 %v345_v2  ;;  %317 = vmatpush3.bf16.msra.mxu1 %v347_v7 }
  0x3f   :  { %318 = vmatprep.subr.bf16.mxu1 %v463_v0  ;;  %p436_p0 = pnand %p435_p13, %p429_p10 }
  0x41   :  { %311 = vmatmul.mubr.msk.bf16.vlgmr.msra.gmra.mrb[0].mxu0 %vm89_vm1, %v65_v5 }
  0x42   :  { %319 = vmatpush3.bf16.msra.mxu1 %v348_v8 }
  0x43   :  { %320 = vmatprep.subr.bf16.mxu1 %v463_v0 }
  0x46   :  { %321 = vmatpush3.bf16.msra.mxu1 %v349_v9 }
  0x47   :  { %322 = vmatprep.subr.bf16.mxu1 %v463_v0 }
  0x4a   :  { %323 = vmatpush3.bf16.msra.mxu1 %v350_v10 }
  0x4b   :  { %324 = vmatprep.subr.bf16.mxu1 %v463_v0 }
  0x4e   :  { %325 = vmatpush3.bf16.msra.mxu1 %v351_v11 }
  0x4f   :  { %326 = vmatprep.subr.bf16.mxu1 %v463_v0 }
  0x52   :  { %327 = vmatpush3.bf16.msra.mxu1 %v352_v12 }
  0x53   :  { %328 = vmatprep.subr.bf16.mxu1 %v463_v0 }
  0x56   :  { %329 = vmatpush3.bf16.msra.mxu1 %v353_v13 }
 0x114   :  { %v127_v15 = vpop.f32.mrb[0].mxu0 }
 0x115   :  { %v128_v16 = vadd.f32 %v279_v14, %v127_v15  ;;  %v312_v17 = vpop.f32.mrb[1].mxu0 }
 0x116   :  { %v130_v18 = vpop.f32.mrb[2].mxu0 }
 0x117   :  { %v283_v19 = vmul.f32 -1.442695, %v128_v16  ;;  %v131_v20 = vadd.f32 %v279_v14, %v130_v18  ;;  %v313_v21 = vpop.f32.mrb[3].mxu0 }
 0x119   :  { %354 = vpow2.f32 %v283_v19  ;;  %v284_v22 = vmul.f32 -1.442695, %v131_v20 }
 0x11b   :  { %356 = vpow2.f32 %v284_v22 }
 0x123   :  { %v355_v23 = vpop.eup %354 }
 0x124   :  { %v140_v24 = vadd.f32 1.0, %v355_v23 }
 0x125   :  { %v357_v25 = vpop.eup %356 }
 0x126   :  { %v141_v26 = vadd.f32 1.0, %v357_v25  ;;  %358 = vrcp.f32 %v140_v24 }
 0x128   :  { %360 = vrcp.f32 %v141_v26 }
 0x130   :  { %v359_v27 = vpop.eup %358 }
 0x132   :  { %v361_v28 = vpop.eup %360 }
 0x133   :  { %v146_v29 = vpack.c.bf16 %v361_v28, %v359_v27 }
 0x135   :  { %331 = vmatmul.mubr.bf16.vlgmr.msra.gmra.mrb[0].mxu1 %v146_v29 }
 0x208   :  { %v252_v31 = vpop.f32.mrb[0].mxu1 }
 0x209   :  { %v253_v32 = vadd.f32 %v285_v30, %v252_v31  ;;  %v332_v33 = vpop.f32.mrb[1].mxu1 }
 0x20a   :  { %v255_v34 = vpop.f32.mrb[2].mxu1 }
 0x20b   :  { %259 = vst [vmem:[#allocation8] sm:$0xff] %v253_v32  ;;  %v256_v35 = vadd.f32 %v285_v30, %v255_v34  ;;  %v333_v36 = vpop.f32.mrb[3].mxu1 }
 0x20d   :  { %260 = vst [vmem:[#allocation8 + $0x8] sm:$0xff] %v256_v35 }
 0x20e   :  { %439 = shalt.err (!%p436_p0)
}
 0x20f   :  { %s440_s12 = scalar_lea.hbm %s567_s5, 256 }
 0x210   :  { %p441_p1 = scmp.ne.s32.totalorder %s567_s5, %s440_s12  ;;  %p444_p2 = scmp.lt.u32.totalorder %s440_s12, %s567_s5 }
 0x212   :  { %p446_p3 = pnand %p444_p2, %p441_p1 }
 0x214   :  { %449 = shalt.err (!%p446_p3)
}
 0x215   :  { %272 = dma.vmem_to_hbm [thread:$0]  %s267_s9, 256, %s567_s5, [#allocation4], %s460_s1, %s460_s1, %s461_s17  }
 0x216   :  { %454 = dma.done.wait [#allocation4], 256  }
 0x217   :  { %455 = vsyncadd [#allocation4], 4294967040 }
 0x218   :  { %276 = vsyncpa [#allocation3], 1 }
 0x219   :  { %277 = vsyncpa [#allocation6], 1 }
 0x21a   :  { %278 = vsyncpa [#allocation4], 1 }

</bundles_post_ra>
